<compile_context>
chip_gen: v7x
topology: tpu7x:2x2x1
jax: 0.10.0
libtpu: 0.0.40
codegen_flags: <defaults>
</compile_context>

<pallas_src>
import functools

import numpy as np
import jax
import jax.numpy as jnp
from jax import lax
from jax.experimental import pallas as pl
from jax.experimental.pallas import tpu as pltpu

IGNORE_INDEX = 255
NEG_INF = -1e30


def _cross_ce_kernel(ds_ids_ref, x_ref, rm_ref, bias_ref, tgt_ref,
                     loss_ref, cnt_ref, *, n_pixels, tiles_per_group):
    # ds_ids_ref : SMEM [B] int32 (scalar prefetch)
    # x_ref      : VMEM [1, C, TILE_P]            logits tile (pixels on lanes)
    # rm_ref     : VMEM [n_datasets, N_max, C]    all remap matrices (resident)
    # bias_ref   : VMEM [n_datasets, N_max, 1]    0 for real rows, -1e30 for pad rows
    # tgt_ref    : VMEM [1, 1, TILE_P] (narrow int dtype; 255 = ignore)
    # loss_ref   : VMEM [1, 1, 1] per-(batch, group) NLL sum   (accumulated over p)
    # cnt_ref    : VMEM [1, 1, 1] per-(batch, group) valid-pixel count
    b = pl.program_id(0)
    g = pl.program_id(1)
    p = pl.program_id(2)
    d = ds_ids_ref[b]

    x = x_ref[0]                                  # [C, TILE_P]
    rm = rm_ref[d]                                # [N_max, C]   (dynamic select)
    bias = bias_ref[d]                            # [N_max, 1]
    tgt = tgt_ref[0].astype(jnp.int32)            # [1, TILE_P]  widen on the VPU

    # remap logits on the MXU: [N_max, C] @ [C, TILE_P] -> [N_max, TILE_P]
    s = lax.dot_general(rm, x,
                        dimension_numbers=(((1,), (0,)), ((), ())),
                        preferred_element_type=jnp.float32)
    s = s + bias                                  # mask padded classes (lane broadcast)

    n_max, tile_len = s.shape

    # numerically stable log-sum-exp over the (sublane) class axis
    m = jnp.max(s, axis=0, keepdims=True)                                 # [1, TILE_P]
    lse = m + jnp.log(jnp.sum(jnp.exp(s - m), axis=0, keepdims=True))     # [1, TILE_P]

    # target-class logit via one-hot select (labels in [n_valid, 255) are caller
    # errors: they pick a -1e30 row; ignore_index=255 never matches class_ids).
    class_ids = lax.broadcasted_iota(jnp.int32, (n_max, tile_len), 0)
    picked = jnp.sum(jnp.where(class_ids == tgt, s, 0.0), axis=0, keepdims=True)

    # lane validity: inside the real image (handles the ragged / clamped last
    # tile without any wrapper-side padding) AND label != ignore_index.
    base = (g * tiles_per_group + p) * tile_len
    pix = base + lax.broadcasted_iota(jnp.int32, (1, tile_len), 1)
    valid = jnp.logical_and(pix < n_pixels, tgt != IGNORE_INDEX)          # [1, TILE_P]

    per_pix = jnp.where(valid, lse - picked, 0.0)                         # NLL per pixel
    tile_loss = jnp.sum(per_pix, axis=-1, keepdims=True)                  # [1, 1]
    tile_cnt = jnp.sum(valid.astype(jnp.float32), axis=-1, keepdims=True)

    @pl.when(p == 0)
    def _():
        loss_ref[...] = jnp.zeros_like(loss_ref)
        cnt_ref[...] = jnp.zeros_like(cnt_ref)

    loss_ref[0] += tile_loss
    cnt_ref[0] += tile_cnt


def cross_datasets_ce_loss_pallas(logits_nchw, target_bhw, dataset_ids,
                                  remap_all, n_cats, *,
                                  tile_p=None, pixel_groups=1):
    """logits_nchw: [B,C,H,W] (f32 or bf16 as produced by the model),
       target_bhw: [B,H,W] integer labels (uint8/int16/int32; 255 = ignore),
       dataset_ids: [B] int, remap_all: [n_datasets, N_max, C] (rows >= n_cats[i]
       are zero padding), n_cats: [n_datasets] int.
       Fully on-device and jittable; no wrapper-side pad or dtype cast of the
       big tensors."""
    B, C, H, W = logits_nchw.shape
    P = H * W
    n_datasets, N_max, _ = remap_all.shape

    # Lane-dense layout: pixels on the last (lane) axis. These reshapes are
    # trailing-dim collapses -> free (no HBM pass).
    x = logits_nchw.reshape(B, C, P)
    tgt = target_bhw.reshape(B, 1, P)             # keep the caller's narrow dtype
    ds_ids = jnp.asarray(dataset_ids, jnp.int32)
    rm = remap_all.astype(x.dtype)                # tiny (KB): cast is negligible

    # Per-dataset padded-class bias: 0 for rows < n_cats[i], -1e30 otherwise.
    ncats = jnp.asarray(n_cats, jnp.int32)
    row_ids = jnp.arange(N_max, dtype=jnp.int32)
    bias = jnp.where(row_ids[None, :, None] < ncats[:, None, None],
                     0.0, NEG_INF).astype(jnp.float32)

    # Generation-aware VMEM budget: 128-MiB-VMEM chips (v5e/v6e) get a 64 MiB
    # scoped limit, 64-MiB chips (v7x) stay at 32 MiB.
    try:
        phys_vmem = int(pltpu.get_tpu_info().vmem_capacity_bytes)
    except Exception:
        phys_vmem = 64 * 1024 * 1024
    vmem_limit = 64 * 1024 * 1024 if phys_vmem >= 100 * 1024 * 1024 else 32 * 1024 * 1024

    # Pixel-tile size: biggest multiple of 128 such that the double-buffered
    # input blocks plus ~8 live [N_max, tile_p] f32 temporaries fit the budget.
    if tile_p is None:
        budget = (vmem_limit * 3) // 4
        per_pix_bytes = (2 * C * x.dtype.itemsize      # double-buffered logits block
                         + 2 * tgt.dtype.itemsize      # double-buffered label block
                         + 8 * N_max * 4)              # f32 temporaries in the kernel
        tile_p = (budget // per_pix_bytes) // 128 * 128
        tile_p = int(max(128, min(tile_p, 65536)))
    tile_p = int(max(128, -(-int(tile_p) // 128) * 128))
    tile_p = min(tile_p, -(-P // 128) * 128)

    n_tiles = -(-P // tile_p)                      # ragged last tile masked in-kernel
    G = int(max(1, min(int(pixel_groups), n_tiles)))
    tiles_per_group = -(-n_tiles // G)

    def _tile_idx(g, p):
        # Clamp logical tiles past the end to the last real tile; the kernel's
        # lane mask (pix < P) zeroes their contribution.
        return jnp.minimum(g * tiles_per_group + p, n_tiles - 1)

    grid_spec = pltpu.PrefetchScalarGridSpec(
        num_scalar_prefetch=1,
        grid=(B, G, tiles_per_group),
        in_specs=[
            pl.BlockSpec((1, C, tile_p), lambda b, g, p, ds: (b, 0, _tile_idx(g, p))),
            # tiny remap tables / bias: whole-array blocks, resident across steps
            pl.BlockSpec((n_datasets, N_max, C), lambda b, g, p, ds: (0, 0, 0)),
            pl.BlockSpec((n_datasets, N_max, 1), lambda b, g, p, ds: (0, 0, 0)),
            pl.BlockSpec((1, 1, tile_p), lambda b, g, p, ds: (b, 0, _tile_idx(g, p))),
        ],
        out_specs=[
            pl.BlockSpec((1, 1, 1), lambda b, g, p, ds: (b, g, 0)),
            pl.BlockSpec((1, 1, 1), lambda b, g, p, ds: (b, g, 0)),
        ],
    )

    kernel = functools.partial(_cross_ce_kernel,
                               n_pixels=P, tiles_per_group=tiles_per_group)

    loss_bg, cnt_bg = pl.pallas_call(
        kernel,
        out_shape=(jax.ShapeDtypeStruct((B, G, 1), jnp.float32),
                   jax.ShapeDtypeStruct((B, G, 1), jnp.float32)),
        grid_spec=grid_spec,
        compiler_params=pltpu.CompilerParams(
            dimension_semantics=("parallel", "parallel", "arbitrary"),
            vmem_limit_bytes=vmem_limit),
    )(ds_ids, x, rm, bias, tgt)

    loss_sum = jnp.sum(loss_bg, axis=(1, 2))       # [B]
    cnt = jnp.sum(cnt_bg, axis=(1, 2))             # [B]

    # On-device per-dataset mean and sum over present datasets (no host sync).
    per_ds_loss = jax.ops.segment_sum(loss_sum, ds_ids, num_segments=n_datasets)
    per_ds_cnt = jax.ops.segment_sum(cnt, ds_ids, num_segments=n_datasets)
    n_samples = jax.ops.segment_sum(jnp.ones((B,), jnp.float32), ds_ids,
                                    num_segments=n_datasets)
    present = n_samples > 0
    # NOTE: a present dataset whose every pixel is ignore_index contributes 0
    # here (PyTorch reduction='mean' would return NaN for that corner case).
    safe_cnt = jnp.where(per_ds_cnt > 0, per_ds_cnt, 1.0)
    per_ds_mean = jnp.where(per_ds_cnt > 0, per_ds_loss / safe_cnt, 0.0)
    return jnp.sum(jnp.where(present, per_ds_mean, 0.0))


def reference_loss(logits_nchw, target_bhw, dataset_ids, remap_list):
    """Pure-JAX reference mirroring the PyTorch forward."""
    dsid = np.asarray(dataset_ids)
    logits = jnp.asarray(logits_nchw)
    target = jnp.asarray(target_bhw).astype(jnp.int32)
    loss = None
    for i, RM in enumerate(remap_list):
        mask = dsid == i
        if not mask.any():
            continue
        idx = np.nonzero(mask)[0]
        sel = logits[idx]                                          # [bi,C,H,W]
        remap = jnp.einsum('bchw,nc->bnhw', sel, RM)               # [bi,n_i,H,W]
        tgt = target[idx]                                          # [bi,H,W]
        logp = jax.nn.log_softmax(remap, axis=1)
        valid = tgt != IGNORE_INDEX
        tgt_safe = jnp.where(valid, tgt, 0)
        picked = jnp.take_along_axis(logp, tgt_safe[:, None], axis=1)[:, 0]
        per = jnp.where(valid, -picked, 0.0)
        li = per.sum() / valid.sum()
        loss = li if loss is None else loss + li
    return loss


def _make_targets(key, dataset_ids, n_cats, H, W, ignore_frac=0.1):
    """uint8 labels (the natural storage dtype for segmentation labels)."""
    k_tgt, k_ign = jax.random.split(key)
    B = len(np.asarray(dataset_ids))
    tgt_rand = np.asarray(jax.random.randint(k_tgt, (B, H, W), 0, 10 ** 6))
    ign_rand = np.asarray(jax.random.uniform(k_ign, (B, H, W)))
    ds_np = np.asarray(dataset_ids)
    tgt_np = np.zeros((B, H, W), np.uint8)
    for b in range(B):
        tgt_np[b] = (tgt_rand[b] % n_cats[ds_np[b]]).astype(np.uint8)
    tgt_np[ign_rand < ignore_frac] = IGNORE_INDEX
    return jnp.asarray(tgt_np)


if __name__ == "__main__":
    # synthetic "configer" values
    n_datasets = 2
    n_cats = [7, 11]                 # per-dataset class counts
    num_unify_classes = 16           # C of the unified logits
    B = 4
    C = num_unify_classes
    N_max = max(n_cats)

    # deterministic remap matrices: dataset class n collects unified classes c with c % n_i == n
    remap_list = []
    remap_all = np.zeros((n_datasets, N_max, C), np.float32)
    for i, ni in enumerate(n_cats):
        RM = np.zeros((ni, C), np.float32)
        for c in range(C):
            RM[c % ni, c] = 1.0
        remap_list.append(jnp.asarray(RM))
        remap_all[i, :ni, :] = RM
    remap_all = jnp.asarray(remap_all)
    ncats_arr = jnp.asarray(n_cats, jnp.int32)
    dataset_ids = jnp.asarray([0, 1, 1, 0], jnp.int32)

    key = jax.random.PRNGKey(0)
    k1, k2, k3, k4 = jax.random.split(key, 4)

    # ---- test 1: f32 logits, 16x16 image, forced tile_p=128 (2 p-tiles / image,
    #      exercises the p-tile accumulator), jitted end-to-end ---------------
    H, W = 16, 16
    logits = jax.random.normal(k1, (B, C, H, W), jnp.float32)
    target = _make_targets(k2, dataset_ids, n_cats, H, W)
    ref = jax.block_until_ready(
        reference_loss(logits, target, dataset_ids, remap_list))

    loss_f32_fn = jax.jit(functools.partial(
        cross_datasets_ce_loss_pallas, tile_p=128))
    out_f32 = jax.block_until_ready(
        loss_f32_fn(logits, target, dataset_ids, remap_all, ncats_arr))
    assert np.allclose(np.asarray(out_f32), np.asarray(ref),
                       rtol=1e-4, atol=1e-4), (out_f32, ref)

    # ---- test 2: caller-provided bf16 logits (producer-side cast), default
    #      generation-aware tile_p ------------------------------------------
    logits_bf16 = logits.astype(jnp.bfloat16)
    loss_bf16_fn = jax.jit(cross_datasets_ce_loss_pallas)
    out_bf16 = jax.block_until_ready(
        loss_bf16_fn(logits_bf16, target, dataset_ids, remap_all, ncats_arr))
    assert np.allclose(np.asarray(out_bf16), np.asarray(ref),
                       rtol=2e-2, atol=2e-2), (out_bf16, ref)

    # ---- test 3: ragged pixel count (16x20 -> P=320, not a multiple of 128)
    #      with NO wrapper padding, plus pixel_groups=2 (2-TC split path) ----
    H2, W2 = 16, 20
    logits2 = jax.random.normal(k3, (B, C, H2, W2), jnp.float32)
    target2 = _make_targets(k4, dataset_ids, n_cats, H2, W2)
    ref2 = jax.block_until_ready(
        reference_loss(logits2, target2, dataset_ids, remap_list))

    loss_ragged_fn = jax.jit(functools.partial(
        cross_datasets_ce_loss_pallas, tile_p=128, pixel_groups=2))
    out_ragged = jax.block_until_ready(
        loss_ragged_fn(logits2, target2, dataset_ids, remap_all, ncats_arr))
    assert np.allclose(np.asarray(out_ragged), np.asarray(ref2),
                       rtol=1e-4, atol=1e-4), (out_ragged, ref2)

    print("KERNEL_OK")
</pallas_src>

<mosaic_0001>
module attributes {stable_mosaic.version = 11 : i64} {
  func.func @_cross_ce_kernel(%arg0: i32, %arg1: i32, %arg2: i32, %arg3: memref<4xi32, #tpu.memory_space<smem>>, %arg4: memref<1x16x128xf32, #tpu.memory_space<vmem>>, %arg5: memref<2x11x16xf32, #tpu.memory_space<vmem>>, %arg6: memref<2x11x1xf32, #tpu.memory_space<vmem>>, %arg7: memref<1x1x128xi8, #tpu.memory_space<vmem>>, %arg8: memref<1x1x1xf32, #tpu.memory_space<vmem>>, %arg9: memref<1x1x1xf32, #tpu.memory_space<vmem>>) attributes {dimension_semantics = [#tpu.dimension_semantics<parallel>, #tpu.dimension_semantics<parallel>, #tpu.dimension_semantics<arbitrary>], iteration_bounds = array<i64: 4, 1, 2>, scalar_prefetch = 1 : i64, scratch_operands = 0 : i64, tpu.core_type = #tpu.core_type<tc>, window_params = [{transform_indices = @transform_0, window_bounds = array<i64: 1, 16, 128>}, {pipeline_mode = #tpu.pipeline_mode<synchronous>, transform_indices = @transform_1, window_bounds = array<i64: 2, 11, 16>}, {pipeline_mode = #tpu.pipeline_mode<synchronous>, transform_indices = @transform_2, window_bounds = array<i64: 2, 11, 1>}, {transform_indices = @transform_3, window_bounds = array<i64: 1, 1, 128>}, {transform_indices = @transform_4, window_bounds = array<i64: 1, 1, 1>}, {transform_indices = @transform_5, window_bounds = array<i64: 1, 1, 1>}]} {
    %0 = arith.index_cast %arg0 : i32 to index
    %1 = memref.load %arg3[%0] : memref<4xi32, #tpu.memory_space<smem>>
    %c0 = arith.constant 0 : index
    %c0_0 = arith.constant 0 : index
    %c0_1 = arith.constant 0 : index
    %2 = vector.load %arg4[%c0, %c0_0, %c0_1] : memref<1x16x128xf32, #tpu.memory_space<vmem>>, vector<1x16x128xf32>
    %3 = vector.shape_cast %2 : vector<1x16x128xf32> to vector<16x128xf32>
    %4 = arith.index_cast %1 : i32 to index
    %c0_2 = arith.constant 0 : index
    %c0_3 = arith.constant 0 : index
    %5 = vector.load %arg5[%4, %c0_2, %c0_3] : memref<2x11x16xf32, #tpu.memory_space<vmem>>, vector<1x11x16xf32>
    %6 = vector.shape_cast %5 : vector<1x11x16xf32> to vector<11x16xf32>
    %7 = arith.index_cast %1 : i32 to index
    %c0_4 = arith.constant 0 : index
    %c0_5 = arith.constant 0 : index
    %8 = vector.load %arg6[%7, %c0_4, %c0_5] : memref<2x11x1xf32, #tpu.memory_space<vmem>>, vector<1x11x1xf32>
    %9 = vector.shape_cast %8 : vector<1x11x1xf32> to vector<11x1xf32>
    %c0_6 = arith.constant 0 : index
    %c0_7 = arith.constant 0 : index
    %c0_8 = arith.constant 0 : index
    %10 = vector.load %arg7[%c0_6, %c0_7, %c0_8] : memref<1x1x128xi8, #tpu.memory_space<vmem>>, vector<1x1x128xi8>
    %11 = vector.shape_cast %10 : vector<1x1x128xi8> to vector<1x128xi8>
    %12 = arith.extui %11 : vector<1x128xi8> to vector<1x128xi32>
    %cst = arith.constant dense<0.000000e+00> : vector<11x128xf32>
    %13 = tpu.matmul %6, %3, %cst {dimension_numbers = #tpu.dot_dimension_numbers<[1], [0], [0], [1], [0, 0, 1, 1], [], []>} : vector<11x16xf32>, vector<16x128xf32>, vector<11x128xf32> -> vector<11x128xf32>
    %14 = vector.broadcast %9 : vector<11x1xf32> to vector<11x128xf32>
    %15 = arith.addf %13, %14 : vector<11x128xf32>
    %cst_9 = arith.constant dense<0xFF800000> : vector<128xf32>
    %16 = vector.multi_reduction <maximumf>, %15, %cst_9 [0] : vector<11x128xf32> to vector<128xf32>
    %17 = vector.shape_cast %16 : vector<128xf32> to vector<1x128xf32>
    %18 = vector.broadcast %17 : vector<1x128xf32> to vector<11x128xf32>
    %19 = arith.subf %15, %18 : vector<11x128xf32>
    %20 = math.exp %19 : vector<11x128xf32>
    %cst_10 = arith.constant dense<0.000000e+00> : vector<128xf32>
    %21 = vector.multi_reduction <add>, %20, %cst_10 [0] : vector<11x128xf32> to vector<128xf32>
    %22 = vector.shape_cast %21 : vector<128xf32> to vector<1x128xf32>
    %23 = math.log %22 : vector<1x128xf32>
    %24 = arith.addf %17, %23 : vector<1x128xf32>
    %25 = tpu.iota {dimensions = array<i32: 0>} : vector<11x128xi32>
    %26 = vector.broadcast %12 : vector<1x128xi32> to vector<11x128xi32>
    %27 = arith.cmpi eq, %25, %26 : vector<11x128xi32>
    %cst_11 = arith.constant 0.000000e+00 : f32
    %28 = vector.broadcast %cst_11 : f32 to vector<11x128xf32>
    %29 = arith.select %27, %15, %28 : vector<11x128xi1>, vector<11x128xf32>
    %cst_12 = arith.constant dense<0.000000e+00> : vector<128xf32>
    %30 = vector.multi_reduction <add>, %29, %cst_12 [0] : vector<11x128xf32> to vector<128xf32>
    %31 = vector.shape_cast %30 : vector<128xf32> to vector<1x128xf32>
    %c2_i32 = arith.constant 2 : i32
    %32 = arith.muli %arg1, %c2_i32 : i32
    %33 = arith.addi %32, %arg2 : i32
    %c128_i32 = arith.constant 128 : i32
    %34 = arith.muli %33, %c128_i32 : i32
    %35 = tpu.iota {dimensions = array<i32: 1>} : vector<1x128xi32>
    %36 = vector.broadcast %34 : i32 to vector<1x128xi32>
    %37 = arith.addi %36, %35 : vector<1x128xi32>
    %c256_i32 = arith.constant 256 : i32
    %38 = vector.broadcast %c256_i32 : i32 to vector<1x128xi32>
    %39 = arith.cmpi slt, %37, %38 : vector<1x128xi32>
    %c255_i32 = arith.constant 255 : i32
    %40 = vector.broadcast %c255_i32 : i32 to vector<1x128xi32>
    %41 = arith.cmpi ne, %12, %40 : vector<1x128xi32>
    %42 = arith.andi %39, %41 : vector<1x128xi1>
    %43 = arith.subf %24, %31 : vector<1x128xf32>
    %cst_13 = arith.constant 0.000000e+00 : f32
    %44 = vector.broadcast %cst_13 : f32 to vector<1x128xf32>
    %45 = arith.select %42, %43, %44 : vector<1x128xi1>, vector<1x128xf32>
    %cst_14 = arith.constant dense<0.000000e+00> : vector<1xf32>
    %46 = vector.multi_reduction <add>, %45, %cst_14 [1] : vector<1x128xf32> to vector<1xf32>
    %47 = vector.shape_cast %46 : vector<1xf32> to vector<1x1xf32>
    %48 = arith.extui %42 : vector<1x128xi1> to vector<1x128xi32>
    %49 = arith.sitofp %48 : vector<1x128xi32> to vector<1x128xf32>
    %cst_15 = arith.constant dense<0.000000e+00> : vector<1xf32>
    %50 = vector.multi_reduction <add>, %49, %cst_15 [1] : vector<1x128xf32> to vector<1xf32>
    %51 = vector.shape_cast %50 : vector<1xf32> to vector<1x1xf32>
    %c0_i32 = arith.constant 0 : i32
    %52 = arith.cmpi eq, %arg2, %c0_i32 : i32
    %53 = arith.extui %52 : i1 to i32
    %c0_i32_16 = arith.constant 0 : i32
    %54 = arith.cmpi ne, %53, %c0_i32_16 : i32
    scf.if %54 {
      %cst_29 = arith.constant 0.000000e+00 : f32
      %67 = vector.broadcast %cst_29 : f32 to vector<1x1x1xf32>
      %c0_30 = arith.constant 0 : index
      %c0_31 = arith.constant 0 : index
      %c0_32 = arith.constant 0 : index
      %68 = vector.load %arg8[%c0_30, %c0_31, %c0_32] : memref<1x1x1xf32, #tpu.memory_space<vmem>>, vector<1x1x1xf32>
      tpu.vector_store %arg8[%c0_30, %c0_31, %c0_32], %67 {strides = array<i32>} : memref<1x1x1xf32, #tpu.memory_space<vmem>>, vector<1x1x1xf32>,
      %cst_33 = arith.constant 0.000000e+00 : f32
      %69 = vector.broadcast %cst_33 : f32 to vector<1x1x1xf32>
      %c0_34 = arith.constant 0 : index
      %c0_35 = arith.constant 0 : index
      %c0_36 = arith.constant 0 : index
      %70 = vector.load %arg9[%c0_34, %c0_35, %c0_36] : memref<1x1x1xf32, #tpu.memory_space<vmem>>, vector<1x1x1xf32>
      tpu.vector_store %arg9[%c0_34, %c0_35, %c0_36], %69 {strides = array<i32>} : memref<1x1x1xf32, #tpu.memory_space<vmem>>, vector<1x1x1xf32>,
    } else {
    }
    %c0_17 = arith.constant 0 : index
    %c0_18 = arith.constant 0 : index
    %c0_19 = arith.constant 0 : index
    %55 = vector.load %arg8[%c0_17, %c0_18, %c0_19] : memref<1x1x1xf32, #tpu.memory_space<vmem>>, vector<1x1x1xf32>
    %56 = vector.shape_cast %55 : vector<1x1x1xf32> to vector<1x1xf32>
    %57 = arith.addf %56, %47 : vector<1x1xf32>
    %c0_20 = arith.constant 0 : index
    %c0_21 = arith.constant 0 : index
    %c0_22 = arith.constant 0 : index
    %58 = vector.load %arg8[%c0_20, %c0_21, %c0_22] : memref<1x1x1xf32, #tpu.memory_space<vmem>>, vector<1x1x1xf32>
    %59 = vector.shape_cast %58 : vector<1x1x1xf32> to vector<1x1xf32>
    %60 = vector.shape_cast %57 : vector<1x1xf32> to vector<1x1x1xf32>
    tpu.vector_store %arg8[%c0_20, %c0_21, %c0_22], %60 {strides = array<i32>} : memref<1x1x1xf32, #tpu.memory_space<vmem>>, vector<1x1x1xf32>,
    %c0_23 = arith.constant 0 : index
    %c0_24 = arith.constant 0 : index
    %c0_25 = arith.constant 0 : index
    %61 = vector.load %arg9[%c0_23, %c0_24, %c0_25] : memref<1x1x1xf32, #tpu.memory_space<vmem>>, vector<1x1x1xf32>
    %62 = vector.shape_cast %61 : vector<1x1x1xf32> to vector<1x1xf32>
    %63 = arith.addf %62, %51 : vector<1x1xf32>
    %c0_26 = arith.constant 0 : index
    %c0_27 = arith.constant 0 : index
    %c0_28 = arith.constant 0 : index
    %64 = vector.load %arg9[%c0_26, %c0_27, %c0_28] : memref<1x1x1xf32, #tpu.memory_space<vmem>>, vector<1x1x1xf32>
    %65 = vector.shape_cast %64 : vector<1x1x1xf32> to vector<1x1xf32>
    %66 = vector.shape_cast %63 : vector<1x1xf32> to vector<1x1x1xf32>
    tpu.vector_store %arg9[%c0_26, %c0_27, %c0_28], %66 {strides = array<i32>} : memref<1x1x1xf32, #tpu.memory_space<vmem>>, vector<1x1x1xf32>,
    return
  }
  func.func @transform_0(%arg0: i32, %arg1: i32, %arg2: i32, %arg3: memref<4xi32, #tpu.memory_space<smem>>) -> (i32, i32, i32) {
    %c2_i32 = arith.constant 2 : i32
    %0 = arith.muli %arg1, %c2_i32 : i32
    %1 = arith.addi %0, %arg2 : i32
    %c1_i32 = arith.constant 1 : i32
    %2 = arith.minsi %1, %c1_i32 : i32
    %c0_i32 = arith.constant 0 : i32
    %c0_i32_0 = arith.constant 0 : i32
    return %arg0, %c0_i32, %2 : i32, i32, i32
  }
  func.func @transform_1(%arg0: i32, %arg1: i32, %arg2: i32, %arg3: memref<4xi32, #tpu.memory_space<smem>>) -> (i32, i32, i32) {
    %c0_i32 = arith.constant 0 : i32
    %c0_i32_0 = arith.constant 0 : i32
    %c0_i32_1 = arith.constant 0 : i32
    %c0_i32_2 = arith.constant 0 : i32
    return %c0_i32, %c0_i32_0, %c0_i32_1 : i32, i32, i32
  }
  func.func @transform_2(%arg0: i32, %arg1: i32, %arg2: i32, %arg3: memref<4xi32, #tpu.memory_space<smem>>) -> (i32, i32, i32) {
    %c0_i32 = arith.constant 0 : i32
    %c0_i32_0 = arith.constant 0 : i32
    %c0_i32_1 = arith.constant 0 : i32
    %c0_i32_2 = arith.constant 0 : i32
    return %c0_i32, %c0_i32_0, %c0_i32_1 : i32, i32, i32
  }
  func.func @transform_3(%arg0: i32, %arg1: i32, %arg2: i32, %arg3: memref<4xi32, #tpu.memory_space<smem>>) -> (i32, i32, i32) {
    %c2_i32 = arith.constant 2 : i32
    %0 = arith.muli %arg1, %c2_i32 : i32
    %1 = arith.addi %0, %arg2 : i32
    %c1_i32 = arith.constant 1 : i32
    %2 = arith.minsi %1, %c1_i32 : i32
    %c0_i32 = arith.constant 0 : i32
    %c0_i32_0 = arith.constant 0 : i32
    return %arg0, %c0_i32, %2 : i32, i32, i32
  }
  func.func @transform_4(%arg0: i32, %arg1: i32, %arg2: i32, %arg3: memref<4xi32, #tpu.memory_space<smem>>) -> (i32, i32, i32) {
    %c0_i32 = arith.constant 0 : i32
    %c0_i32_0 = arith.constant 0 : i32
    return %arg0, %arg1, %c0_i32 : i32, i32, i32
  }
  func.func @transform_5(%arg0: i32, %arg1: i32, %arg2: i32, %arg3: memref<4xi32, #tpu.memory_space<smem>>) -> (i32, i32, i32) {
    %c0_i32 = arith.constant 0 : i32
    %c0_i32_0 = arith.constant 0 : i32
    return %arg0, %arg1, %c0_i32 : i32, i32, i32
  }
}

</mosaic_0001>

<bundles_post_ra>
// kernel: cross_datasets_ce_loss_pallas.1
= control target key start
LH: loop header
LB: loop body
LE: loop exit
PB: predicated region body
PF: predicated region fallthrough
CT: control target
= control target key end

     0   :  { %s1039_s0 = inlined_call_operand.vmem [shape: s32[4], index: 0, kind: input, shape index: {}]   ;;  %s1040_s1 = inlined_call_operand.vmem [shape: f32[4,16,256], index: 1, kind: input, shape index: {}]   ;;  %s1041_s2 = inlined_call_operand.vmem [shape: f32[2,11,16], index: 2, kind: input, shape index: {}]   ;;  %s1042_s3 = inlined_call_operand.vmem [shape: f32[2,11,1], index: 3, kind: input, shape index: {}]   ;;  %s1043_s4 = inlined_call_operand.vmem [shape: u8[4,1,256], index: 4, kind: input, shape index: {}]   ;;  %s1044_s5 = inlined_call_operand.vmem [shape: f32[4,1,1], index: 5, kind: output, shape index: {0}]   ;;  %s1045_s6 = inlined_call_operand.vmem [shape: f32[4,1,1], index: 6, kind: output, shape index: {1}]  }
   0x1   :  { %s12_s23 = sshll.u32 %s1039_s0, 4  ;;  %s13_s23 = int_to_ptr.vmem [resolvable:$true] %s12_s23 }
   0x2   :  { %s807_s24 = scalar_lea.vmem %s13_s23, 16  ;;  %p812_p1 = scmp.lt.s32.totalorder %s13_s23, %s13_s23 }
   0x3   :  { %p808_p0 = scmp.ne.s32.totalorder %s13_s23, %s807_s24  ;;  %p813_p2 = scmp.lt.s32.totalorder %s807_s24, %s807_s24 }
   0x5   :  { %p814_p3 = por %p813_p2, %p812_p1 }
   0x7   :  { %p815_p4 = pnand %p814_p3, %p808_p0 }
   0x9   :  { %818 = shalt.err (!%p815_p4)  }
   0xa   :  { %s877_s25 = smov [#allocation3]  }
   0xb   :  { %15 = dma.vmem_to_smem %s13_s23, 16, %s877_s25, [#allocation2] }
   0xc   :  { %847 = dma.done.wait [#allocation2], 16 }
   0xd   :  { %848 = vsyncadd [#allocation2], 4294967280 }
   0xe   :  { %17 = sfence }
   0xf   :  { %s919_s26 = smov 0   ;;  %s921_s27 = smov 0  }
  0x10   :  { %s923_s28 = smov 0   ;;  %s925_s0 = smov 0  }
  0x11   :  { %s927_s29 = smov 0   ;;  %s929_s30 = smov 0  }
  0x12   :  { %s931_s7 = smov 0  }
  0x13 LB: > { %s35_s8 = sadd.s32 1, %s867_s29  ;;  %s42_s9 = sadd.s32 1, %s871_s30  ;;  %s875_s7 = sphi %s931_s7, %s23_s7   ;;  %s871_s30 = sphi %s929_s30, %s1051_s30   ;;  %s867_s29 = sphi %s927_s29, %s1050_s29   ;;  %s863_s0 = sphi %s925_s0, %s1049_s0   ;;  %s859_s28 = sphi %s923_s28, %s1048_s28   ;;  %s855_s27 = sphi %s921_s27, %s1047_s27   ;;  %s851_s26 = sphi %s919_s26, %s1046_s26  }
  0x14   : > { %p36_p5 = scmp.ge.s32.totalorder %s35_s8, 2  ;;  %p48_p6 = scmp.lt.s32.totalorder %s867_s29, 1 }
  0x15   : > { %p66_p7 = scmp.ne.s32.totalorder %s855_s27, %s851_s26  ;;  %p67_p10 = scmp.eq.s32.totalorder %s875_s7, 0 }
  0x16   : > { %s1053_s8 = smov (%p36_p5, %s35_s8), 0  ;;  %s1055_s9 = smov (!%p36_p5, %s42_s9), %s871_s30 }
  0x17   : > { %s49_s10 = scalar_select %p48_p6, %s867_s29, 1 }
  0x18   : > { %p44_p8 = scmp.ge.s32.totalorder %s1055_s9, 4  ;;  %p52_p9 = scmp.lt.s32.totalorder %s1053_s8, 1 }
  0x19   : > { %p68_p11 = por %p67_p10, %p66_p7  ;;  %s59_s15 = sadd.s32 1, %s855_s27 }
  0x1a   : > { %s1057_s9 = smov (%p44_p8, %s1055_s9), 0  ;;  %p707_p13 = scmp.ge.s32.totalorder %s875_s7, 8 }
  0x1b   : > { %s53_s11 = scalar_select %p52_p9, %s1053_s8, 1 }
  0x1c   : > { %s54_s12 = ssub.s32 %s871_s30, %s1057_s9  ;;  %232 = sbr.rel (%p707_p13) target bundleno = 42 (0x2a), region = 24 }
  0x1d   : > { %s55_s13 = ssub.s32 %s49_s10, %s53_s11 }
  0x1e   : > { %s56_s14 = sor.u32 %s55_s13, %s54_s12 }
  0x1f   : > { %p57_p12 = scmp.eq.s32.totalorder %s56_s14, 0 }
  0x21   : > { %s972_s16 = scalar_select %p57_p12, %s855_s27, %s59_s15  }
  0x23   : > { %235 = sbr.rel (!%p68_p11) target bundleno = 42 (0x2a), region = 28  ;;  %s237_s17 = sand.u32 (%p68_p11), 1, %s855_s27  }
  0x24   : > { %s709_s18 = sshll.u32 (%p68_p11), %s871_s30, 2  ;;  %s708_s19 = sshll.u32 (%p68_p11), %s237_s17, 4 }
  0x25   : > { %s245_s20 = sadd.s32 (%p68_p11), %s709_s18, %s49_s10  ;;  %s239_s25 = scalar_lea.vmem (%p68_p11), [#allocation4], %s708_s19 }
  0x26   : > { %s710_s21 = sshll.u32 (%p68_p11), %s245_s20, 3 }
  0x27   : > { %s247_s24 = scalar_lea.vmem (%p68_p11), %s1040_s1, %s710_s21 }
  0x28   : > { %v277_v0 = vld [vmem:[%s247_s24] sm:$0xff] (%p68_p11)  ;;  %v279_v1 = vld [vmem:[%s247_s24 + $0x10] sm:$0xff] (%p68_p11) }
  0x29   : > { %278 = vst [vmem:[%s239_s25] sm:$0xff] (%p68_p11), %v277_v0  ;;  %280 = vst [vmem:[%s239_s25 + $0x8] sm:$0xff] (%p68_p11), %v279_v1 }
  0x2a PF: > { %p711_p0 = scmp.ge.s32.totalorder %s875_s7, 1  ;;  %p303_p1 = scmp.lt.s32.totalorder %s875_s7, 9 }
  0x2c   : > { %p304_p2 = pnand %p711_p0, %p303_p1 }
  0x2d   : > { %s310_s10 = sand.u32 (!%p304_p2), 1, %s851_s26   ;;  %s386_s11 = sld [smem:[#allocation3 + %s863_s0]] (!%p304_p2)  ;;  %v878_v2 = vmov (!%p304_p2), 0   ;;  %vm409_vm0 = vcmask (!%p304_p2), 130048   ;;  %v517_v10 = vlaneseq (!%p304_p2)  ;;  %vm491_vm1 = vcmask (!%p304_p2), 1042432  }
  0x2e   : > { %307 = sbr.rel (%p304_p2) target bundleno = 485 (0x1e5), region = 70  ;;  %s712_s12 = sshll.u32 (!%p304_p2), %s310_s10, 4  ;;  %800 = vset.pattern.permute.xlu0 (!%p304_p2), %v878_v2  ;;  %vm548_vm7 = vcmask (!%p304_p2), 1040384   ;;  %v879_v0 = vmov (!%p304_p2), 0.0  }
  0x2f   : > { %s312_s13 = scalar_lea.vmem (!%p304_p2), [#allocation4], %s712_s12  ;;  %p363_p3 = scmp.lt.s32.totalorder (!%p304_p2), %s863_s0, 3  ;;  %v518_v13 = vshrl.u32 (!%p304_p2), %v517_v10, 7  ;;  %v540_v53 = vand.u32 (!%p304_p2), 127, %v517_v10 }
  0x30   : > { %v387_v3 = vld [vmem:[%s312_s13] sm:$0xff] (!%p304_p2)  ;;  %v388_v4 = vld [vmem:[%s312_s13 + $0x8] sm:$0xff] (!%p304_p2)  ;;  %p361_p4 = scmp.lt.s32.totalorder (!%p304_p2), %s859_s28, 1  ;;  %p722_p5 = scmp.ne.s32.totalorder (!%p304_p2), %s859_s28, 0 }
  0x31   : > { %v736_v5 = vpack.c.bf16 (!%p304_p2), %v388_v4, %v387_v3  ;;  %v522_v15 = vsub.s32 (!%p304_p2), 0, %v518_v13  ;;  %v519_v17 = vadd.s32 (!%p304_p2), 8, %v518_v13 }
  0x33   : > { %737 = vmatprep.subr.bf16.mxu0 (!%p304_p2), %v736_v5  ;;  %s717_s14 = sshll.u32 (!%p304_p2), %s386_s11, 4 }
  0x34   : > { %739 = vmatpush3.bf16.msra.mxu0 (!%p304_p2), %v736_v5  ;;  %s390_s26 = scalar_lea.vmem (!%p304_p2), %s1041_s2, %s717_s14  ;;  %s393_s20 = scalar_lea.vmem (!%p304_p2), %s1042_s3, %s717_s14 }
  0x35   : > { %v391_v6 = vld [vmem:[%s390_s26] sm:$0xff]  ;;  %v392_v7 = vld [vmem:[%s390_s26 + $0x8] sm:$0x7]  ;;  %s1059_s0 = smov (!%p363_p3, %s863_s0), 3  ;;  %vm561_vm8 = vcmask (!%p722_p5), 0  }
  0x36   : > { %v395_v8 = vld [vmem:[%s393_s20 + $0x8] sm:$0x7]  ;;  %733 = vmatprep.mubr.msk.f32.mxu0 %vm409_vm0, %v391_v6  ;;  %v394_v9 = vld [vmem:[%s393_s20] sm:$0xff]  ;;  %s995_s23 = scalar_lea.vmem %s1044_s5, %s1059_s0  ;;  %s1000_s10 = scalar_lea.vmem %s1045_s6, %s1059_s0  ;;  %v880_v6 = vmov (!%p722_p5), 0.0  }
  0x37   : > { %406 = vperm.xlu0 %800, %v395_v8   ;;  %734 = vmatmul.mubr.msk.f32.vlgmr.msra.gmra.mrb[0].mxu0 %vm409_vm0, %v392_v7  ;;  %s362_s11 = scalar_select %p361_p4, %s859_s28, 1 }
  0x38   : > { %s716_s12 = sshll.u32 %s1059_s0, 1  ;;  %s720_s0 = sshll.u32 %s859_s28, 7  ;;  %562 = vst.msk [vmem:[%s995_s23] sm:$0x1] (!%p722_p5), %vm561_vm8, %v880_v6  ;;  %563 = vst.msk [vmem:[%s1000_s10] sm:$0x1] (!%p722_p5), %vm561_vm8, %v880_v6 }
  0x39   : > { %s1061_s11 = smov (!%p361_p4, %s362_s11), 1  ;;  %v541_v54 = vstv %s720_s0 }
  0x3a   : > { %s368_s13 = sadd.s32 %s716_s12, %s1061_s11  ;;  %v542_v56 = vadd.s32 %v541_v54, %v540_v53 }
  0x3b   : > { %401 = vperm.xlu0 %800, %v394_v9   ;;  %s369_s17 = scalar_lea.vmem %s1043_s4, %s368_s13 }
  0x3c   : > { %v396_v11 = vld [vmem:[%s369_s17] sm:$0x1]  ;;  %vm543_vm4 = vcmp.lt.s32.totalorder %v542_v56, 256 }
  0x3d   : > { %v397_v12 = vunpack.c.0.s8 %v396_v11 }
  0x3f   : > { %v398_v14 = vand.u32 255, %v397_v12 }
  0x41   : > { %v523_v18 = vrot.slane %v398_v14, %v522_v15  ;;  %vm544_vm5 = vcmp.ne.s32.totalorder %v398_v14, 255 }
  0x42   : > { %vm545_vm6 = vmand %vm543_vm4, %vm544_vm5 }
  0x43   : > { %vm525_vm2 = vcmp.eq.s32.totalorder %v519_v17, %v523_v18  ;;  %vm524_vm3 = vcmp.eq.s32.totalorder %v518_v13, %v523_v18  ;;  %v721_v1 = vsel %vm545_vm6, 1.0, %v879_v0 }
  0x44   : > { %v554_v3 = vsel %vm548_vm7, %v721_v1, 0.0 }
  0xb6   : > { %v407_v16 = vpop.permute.xlu0 %406 }
  0xba   : > { %v402_v20 = vpop.permute.xlu0 %401 }
 0x10a   : > { %v735_v19 = vpop.f32.mrb[0].mxu0 }
 0x10b   : > { %v488_v21 = vadd.f32 %v735_v19, %v407_v16  ;;  %v482_v22 = vpop.f32.mrb[1].mxu0 }
 0x10c   : > { %v483_v23 = vadd.f32 %v482_v22, %v402_v20 }
 0x10d   : > { %v492_v24 = vsel %vm491_vm1, %v488_v21, -inf  ;;  %v527_v25 = vsel %vm525_vm2, %v488_v21, 0.0 }
 0x10e   : > { %v493_v26 = vmax.f32 %v483_v23, %v492_v24  ;;  %v526_v27 = vsel %vm524_vm3, %v483_v23, 0.0  ;;  %v528_v28 = vsel %vm491_vm1, %v527_v25, 0.0 }
 0x10f   : > { %v529_v29 = vadd.f32 %v528_v28, %v526_v27 }
 0x110   : > { %v494_v30 = vrot.slane %v493_v26, 4 }
 0x111   : > { %v530_v47 = vrot.slane %v529_v29, 4 }
 0x112   : > { %v495_v31 = vmax.f32 %v493_v26, %v494_v30 }
 0x113   : > { %v531_v50 = vadd.f32 %v530_v47, %v529_v29 }
 0x114   : > { %v496_v32 = vrot.slane %v495_v31, 2 }
 0x115   : > { %v532_v52 = vrot.slane %v531_v50, 2 }
 0x116   : > { %v497_v33 = vmax.f32 %v495_v31, %v496_v32 }
 0x117   : > { %v533_v55 = vadd.f32 %v532_v52, %v531_v50 }
 0x118   : > { %v498_v34 = vrot.slane %v497_v33, 1 }
 0x119   : > { %v534_v57 = vrot.slane %v533_v55, 1 }
 0x11a   : > { %v499_v35 = vmax.f32 %v497_v33, %v498_v34 }
 0x11b   : > { %v535_v61 = vadd.f32 %v534_v57, %v533_v55 }
 0x11c   : > { %v500_v36 = vsub.f32 %v483_v23, %v499_v35  ;;  %v501_v37 = vsub.f32 %v488_v21, %v499_v35 }
 0x11e   : > { %v502_v38 = vmul.f32 1.442695, %v500_v36  ;;  %v504_v39 = vmul.f32 1.442695, %v501_v37 }
 0x120   : > { %801 = vpow2.f32 %v502_v38 }
 0x121   : > { %803 = vpow2.f32 %v504_v39 }
 0x12a   : > { %v802_v40 = vpop.eup %801 }
 0x12b   : > { %v804_v41 = vpop.eup %803 }
 0x12c   : > { %v506_v42 = vsel %vm491_vm1, %v804_v41, 0.0 }
 0x12d   : > { %v507_v43 = vadd.f32 %v802_v40, %v506_v42 }
 0x12f   : > { %v508_v44 = vrot.slane %v507_v43, 4 }
 0x131   : > { %v509_v45 = vadd.f32 %v508_v44, %v507_v43 }
 0x133   : > { %v510_v46 = vrot.slane %v509_v45, 2 }
 0x135   : > { %v511_v48 = vadd.f32 %v510_v46, %v509_v45 }
 0x137   : > { %v512_v49 = vrot.slane %v511_v48, 1 }
 0x139   : > { %v513_v51 = vadd.f32 %v512_v49, %v511_v48 }
 0x13b   : > { %805 = vlog2.f32 %v513_v51 }
 0x145   : > { %v806_v58 = vpop.eup %805 }
 0x146   : > { %v515_v59 = vmul.f32 0.6931472, %v806_v58 }
 0x148   : > { %v516_v60 = vadd.f32 %v515_v59, %v499_v35 }
 0x14a   : > { %v546_v62 = vsub.f32 %v516_v60, %v535_v61 }
 0x14c   : > { %v547_v63 = vsel %vm545_vm6, %v546_v62, 0.0 }
 0x14d   : > { %v549_v2 = vsel %vm548_vm7, %v547_v63, 0.0 }
 0x14e   : > { %550 = vadd.xlane.f32.xlu1 %v549_v2 }
 0x152   : > { %555 = vadd.xlane.f32.xlu1 %v554_v3 }
 0x1d9   : > { %560 = sbr.rel (%p722_p5) target bundleno = 480 (0x1e0), region = 78 }
 0x1db   : > { %v551_v4 = vpop.xlane.xlu1 %550 }
 0x1df   : > { %v556_v5 = vpop.xlane.xlu1 %555 }
 0x1e0 PF: > { %v564_v7 = vld [vmem:[%s995_s23] sm:$0x1]  ;;  %vm566_vm9 = vcmask 0  }
 0x1e1   : > { %v568_v8 = vld [vmem:[%s1000_s10] sm:$0x1]  ;;  %v565_v9 = vadd.f32 %v564_v7, %v551_v4 }
 0x1e2   : > { %v569_v10 = vadd.f32 %v568_v8, %v556_v5 }
 0x1e3   : > { %567 = vst.msk [vmem:[%s995_s23] sm:$0x1] %vm566_vm9, %v565_v9 }
 0x1e4   : > { %570 = vst.msk [vmem:[%s1000_s10] sm:$0x1] %vm566_vm9, %v569_v10 }
 0x1e5 PF: > { %s23_s7 = sadd.s32 1, %s875_s7   ;;  %s1046_s26 = smov %s855_s27 }
 0x1e6   : > { %p20_p6 = scmp.ge.s32.totalorder %s23_s7, 10   ;;  %s1047_s27 = smov %s972_s16 }
 0x1e7   : > { %s1048_s28 = smov %s867_s29  ;;  %s1049_s0 = smov %s871_s30 }
 0x1e8   : > { %s1050_s29 = smov %s1053_s8  ;;  %s1051_s30 = smov %s1057_s9 }
 0x1e9   :  { %22 = sbr.rel (!%p20_p6) target bundleno = 19 (0x13), region = 130 }

</bundles_post_ra>
